<compile_context>
chip_gen: v7x
topology: tpu7x:2x2x1
jax: 0.10.0
libtpu: 0.0.40
codegen_flags: <defaults>
</compile_context>

<pallas_src>
import functools

import jax
import jax.numpy as jnp
from jax.experimental import pallas as pl
from jax.experimental.pallas import tpu as pltpu


def _make_group_kernel(N, G, K, Bt):
    # Python scalars only: jnp scalars built at closure time would be captured as
    # kernel constants and rejected by pallas_call.
    BIG = 1e30
    NF = float(N)

    def kernel(xyz_ref, nbr_ref, ctr_ref):
        X = xyz_ref[...]                                   # (Bt, 3, N) f32 channels-first
        Xx = X[:, 0, :]                                    # (Bt, N) — Bt fills the sublanes
        Xy = X[:, 1, :]
        Xz = X[:, 2, :]
        Xx3 = X[:, 0:1, :]                                 # (Bt, 1, N) for 3-D broadcasts
        Xy3 = X[:, 1:2, :]
        Xz3 = X[:, 2:3, :]

        lane_n = jax.lax.broadcasted_iota(jnp.int32, (1, N), 1).astype(jnp.float32)
        lane_n3 = jax.lax.broadcasted_iota(jnp.int32, (1, 1, N), 2).astype(jnp.float32)
        g_row = jax.lax.broadcasted_iota(jnp.int32, (1, G), 1)
        k_row = jax.lax.broadcasted_iota(jnp.int32, (1, 1, K), 2)

        # ---------------- farthest point sampling (first point = index 0) ----------------
        def fps_body(i, carry):
            dist, farthest, cx, cy, cz = carry
            # one-hot of the newly selected point per cloud, (Bt, 1, N)
            sel = (lane_n3 == farthest[:, :, None]).astype(jnp.float32)
            # gather its coordinates on the MXU: (Bt,1,N) x (Bt,3,N) -> (Bt,1,3)
            p = jnp.einsum('bkn,bcn->bkc', sel, X, preferred_element_type=jnp.float32)
            px = p[:, :, 0]                                # (Bt, 1)
            py = p[:, :, 1]
            pz = p[:, :, 2]
            g_hot = (g_row == i).astype(jnp.float32)       # (1, G) static one-hot scatter
            cx = cx + px * g_hot
            cy = cy + py * g_hot
            cz = cz + pz * g_hot
            d2 = (Xx - px) ** 2 + (Xy - py) ** 2 + (Xz - pz) ** 2      # (Bt, N) dense VPU
            dist = jnp.minimum(dist, d2)
            mx = jnp.max(dist, axis=1, keepdims=True)                  # (Bt, 1)
            # first index attaining the max distance (index-free, no argmax)
            farthest = jnp.min(jnp.where(dist == mx, lane_n, NF),
                               axis=1, keepdims=True)
            return dist, farthest, cx, cy, cz

        fps_init = (jnp.full((Bt, N), BIG, jnp.float32),
                    jnp.zeros((Bt, 1), jnp.float32),
                    jnp.zeros((Bt, G), jnp.float32),
                    jnp.zeros((Bt, G), jnp.float32),
                    jnp.zeros((Bt, G), jnp.float32))
        _, _, cx, cy, cz = jax.lax.fori_loop(0, G, fps_body, fps_init)

        # ------------- KNN distance matrix: D = |x|^2 + |c|^2 - 2 c.x  (hoisted norms) -------------
        xsq3 = Xx3 * Xx3 + Xy3 * Xy3 + Xz3 * Xz3           # (Bt, 1, N)
        csq = cx * cx + cy * cy + cz * cz                  # (Bt, G)
        cross = ((-2.0 * cx)[:, :, None] * Xx3
                 + (-2.0 * cy)[:, :, None] * Xy3
                 + (-2.0 * cz)[:, :, None] * Xz3)          # (Bt, G, N)
        D0 = xsq3 + (csq[:, :, None] + cross)              # (Bt, G, N)

        # ---------------- iterative top-K extraction + MXU one-hot gather ----------------
        def knn_body(k, carry):
            D, nbx, nby, nbz = carry
            mn = jnp.min(D, axis=2, keepdims=True)                          # (Bt, G, 1)
            idx = jnp.min(jnp.where(D == mn, lane_n3, NF),
                          axis=2, keepdims=True)                            # (Bt, G, 1)
            hot = (lane_n3 == idx).astype(jnp.float32)                      # (Bt, G, N)
            # gather K-nearest coords on the MXU: (Bt,G,N) x (Bt,3,N) -> (Bt,G,3)
            g = jnp.einsum('bgn,bcn->bgc', hot, X, preferred_element_type=jnp.float32)
            k_hot = (k_row == k).astype(jnp.float32)                        # (1, 1, K)
            nbx = nbx + g[:, :, 0:1] * k_hot                                # (Bt, G, K)
            nby = nby + g[:, :, 1:2] * k_hot
            nbz = nbz + g[:, :, 2:3] * k_hot
            D = D + hot * BIG                                               # exclude selected point
            return D, nbx, nby, nbz

        knn_init = (D0,
                    jnp.zeros((Bt, G, K), jnp.float32),
                    jnp.zeros((Bt, G, K), jnp.float32),
                    jnp.zeros((Bt, G, K), jnp.float32))
        _, nbx, nby, nbz = jax.lax.fori_loop(0, K, knn_body, knn_init)

        # re-center each neighborhood on its group center
        nbx = nbx - cx[:, :, None]
        nby = nby - cy[:, :, None]
        nbz = nbz - cz[:, :, None]

        # lane-dense channels-first stores; wrapper transposes to the PyTorch layout
        nbr_ref[:, 0, :, :] = nbx
        nbr_ref[:, 1, :, :] = nby
        nbr_ref[:, 2, :, :] = nbz
        ctr_ref[:, 0, :] = cx
        ctr_ref[:, 1, :] = cy
        ctr_ref[:, 2, :] = cz

    return kernel


@functools.partial(jax.jit, static_argnums=(1, 2))
def group_forward(xyz, num_group, group_size):
    """xyz: (B, N, 3) -> (neighborhood (B, G, K, 3), center (B, G, 3))."""
    B, N, C = xyz.shape
    assert C == 3
    G, K = num_group, group_size
    assert G <= N and K <= N
    assert N < (1 << 24)  # indices travel as exact float32

    # pack up to 8 point clouds per grid step so the (Bt, N) FPS state fills the sublanes
    Bt = max(d for d in (8, 4, 2, 1) if B % d == 0)

    xyz_t = jnp.transpose(xyz.astype(jnp.float32), (0, 2, 1))         # (B, 3, N) lane-dense

    kernel = _make_group_kernel(N, G, K, Bt)
    nbr_t, ctr_t = pl.pallas_call(
        kernel,
        out_shape=(jax.ShapeDtypeStruct((B, 3, G, K), jnp.float32),
                   jax.ShapeDtypeStruct((B, 3, G), jnp.float32)),
        grid=(B // Bt,),
        in_specs=[pl.BlockSpec((Bt, 3, N), lambda b: (b, 0, 0))],
        out_specs=(pl.BlockSpec((Bt, 3, G, K), lambda b: (b, 0, 0, 0)),
                   pl.BlockSpec((Bt, 3, G), lambda b: (b, 0, 0))),
        compiler_params=pltpu.CompilerParams(
            dimension_semantics=("parallel",)),
    )(xyz_t)

    neighborhood = jnp.transpose(nbr_t, (0, 2, 3, 1))                 # (B, G, K, 3)
    center = jnp.transpose(ctr_t, (0, 2, 1))                          # (B, G, 3)
    return neighborhood, center


if __name__ == "__main__":
    # Small shapes consistent with the module: B=2 point clouds, N=128 points,
    # num_group=8 centers, group_size=16 neighbors per group.
    B, N = 2, 128
    num_group, group_size = 8, 16

    key = jax.random.PRNGKey(0)
    xyz = jax.random.normal(key, (B, N, 3), jnp.float32)

    neighborhood, center = group_forward(xyz, num_group, group_size)
    jax.block_until_ready(neighborhood)
    jax.block_until_ready(center)

    # shape checks
    assert neighborhood.shape == (B, num_group, group_size, 3)
    assert center.shape == (B, num_group, 3)
    assert bool(jnp.all(jnp.isfinite(neighborhood)))
    assert bool(jnp.all(jnp.isfinite(center)))

    # sanity: every center is an original input point, and every reconstructed
    # neighbor (neighborhood + center) is an original input point.
    recon = neighborhood + center[:, :, None, :]                      # (B, G, K, 3)
    d_pts = jnp.min(jnp.sum((recon[:, :, :, None, :] - xyz[:, None, None, :, :]) ** 2,
                            axis=-1), axis=-1)                        # (B, G, K)
    d_ctr = jnp.min(jnp.sum((center[:, :, None, :] - xyz[:, None, :, :]) ** 2,
                            axis=-1), axis=-1)                        # (B, G)
    assert float(jnp.max(d_pts)) < 1e-9
    assert float(jnp.max(d_ctr)) < 1e-9

    print("KERNEL_OK")
</pallas_src>

<mosaic_0001>
module attributes {stable_mosaic.version = 11 : i64} {
  func.func @kernel(%arg0: i32, %arg1: memref<2x3x128xf32, #tpu.memory_space<vmem>>, %arg2: memref<2x3x8x16xf32, #tpu.memory_space<vmem>>, %arg3: memref<2x3x8xf32, #tpu.memory_space<vmem>>) attributes {dimension_semantics = [#tpu.dimension_semantics<parallel>], iteration_bounds = array<i64: 1>, scalar_prefetch = 0 : i64, scratch_operands = 0 : i64, tpu.core_type = #tpu.core_type<tc>, window_params = [{transform_indices = @transform_0, window_bounds = array<i64: 2, 3, 128>}, {transform_indices = @transform_1, window_bounds = array<i64: 2, 3, 8, 16>}, {transform_indices = @transform_2, window_bounds = array<i64: 2, 3, 8>}]} {
    %c0 = arith.constant 0 : index
    %c0_0 = arith.constant 0 : index
    %c0_1 = arith.constant 0 : index
    %0 = vector.load %arg1[%c0, %c0_0, %c0_1] : memref<2x3x128xf32, #tpu.memory_space<vmem>>, vector<2x3x128xf32>
    %1 = vector.extract_strided_slice %0 {offsets = [0, 0, 0], sizes = [2, 1, 128], strides = [1, 1, 1]} : vector<2x3x128xf32> to vector<2x1x128xf32>
    %2 = vector.shape_cast %1 : vector<2x1x128xf32> to vector<2x128xf32>
    %3 = vector.extract_strided_slice %0 {offsets = [0, 1, 0], sizes = [2, 1, 128], strides = [1, 1, 1]} : vector<2x3x128xf32> to vector<2x1x128xf32>
    %4 = vector.shape_cast %3 : vector<2x1x128xf32> to vector<2x128xf32>
    %5 = vector.extract_strided_slice %0 {offsets = [0, 2, 0], sizes = [2, 1, 128], strides = [1, 1, 1]} : vector<2x3x128xf32> to vector<2x1x128xf32>
    %6 = vector.shape_cast %5 : vector<2x1x128xf32> to vector<2x128xf32>
    %7 = vector.extract_strided_slice %0 {offsets = [0, 0, 0], sizes = [2, 1, 128], strides = [1, 1, 1]} : vector<2x3x128xf32> to vector<2x1x128xf32>
    %8 = vector.extract_strided_slice %0 {offsets = [0, 1, 0], sizes = [2, 1, 128], strides = [1, 1, 1]} : vector<2x3x128xf32> to vector<2x1x128xf32>
    %9 = vector.extract_strided_slice %0 {offsets = [0, 2, 0], sizes = [2, 1, 128], strides = [1, 1, 1]} : vector<2x3x128xf32> to vector<2x1x128xf32>
    %10 = tpu.iota {dimensions = array<i32: 1>} : vector<1x128xi32>
    %11 = arith.sitofp %10 : vector<1x128xi32> to vector<1x128xf32>
    %12 = tpu.iota {dimensions = array<i32: 2>} : vector<1x1x128xi32>
    %13 = arith.sitofp %12 : vector<1x1x128xi32> to vector<1x1x128xf32>
    %14 = tpu.iota {dimensions = array<i32: 1>} : vector<1x8xi32>
    %15 = tpu.iota {dimensions = array<i32: 2>} : vector<1x1x16xi32>
    %cst = arith.constant 1.000000e+30 : f32
    %16 = vector.broadcast %cst : f32 to vector<2x128xf32>
    %cst_2 = arith.constant 0.000000e+00 : f32
    %17 = vector.broadcast %cst_2 : f32 to vector<2x1xf32>
    %cst_3 = arith.constant 0.000000e+00 : f32
    %18 = vector.broadcast %cst_3 : f32 to vector<2x8xf32>
    %cst_4 = arith.constant 0.000000e+00 : f32
    %19 = vector.broadcast %cst_4 : f32 to vector<2x8xf32>
    %cst_5 = arith.constant 0.000000e+00 : f32
    %20 = vector.broadcast %cst_5 : f32 to vector<2x8xf32>
    %c0_i32 = arith.constant 0 : i32
    %c8_i32 = arith.constant 8 : i32
    %21 = arith.addi %c0_i32, %c8_i32 : i32
    %c1_i32 = arith.constant 1 : i32
    %22:5 = scf.for %arg4 = %c0_i32 to %21 step %c1_i32 iter_args(%arg5 = %16, %arg6 = %17, %arg7 = %18, %arg8 = %19, %arg9 = %20) -> (vector<2x128xf32>, vector<2x1xf32>, vector<2x8xf32>, vector<2x8xf32>, vector<2x8xf32>)  : i32 {
      %90 = vector.shape_cast %arg6 : vector<2x1xf32> to vector<2x1x1xf32>
      %91 = vector.broadcast %13 : vector<1x1x128xf32> to vector<2x1x128xf32>
      %92 = vector.broadcast %90 : vector<2x1x1xf32> to vector<2x1x128xf32>
      %93 = arith.cmpf oeq, %91, %92 : vector<2x1x128xf32>
      %94 = arith.extui %93 : vector<2x1x128xi1> to vector<2x1x128xi32>
      %95 = arith.sitofp %94 : vector<2x1x128xi32> to vector<2x1x128xf32>
      "tpu.trace_start"() <{level = 10 : i32, message = "bkn,bcn->bkc"}> : () -> ()
      %cst_35 = arith.constant dense<0.000000e+00> : vector<2x1x3xf32>
      %96 = tpu.matmul %95, %0, %cst_35 {dimension_numbers = #tpu.dot_dimension_numbers<[2], [2], [1], [1], [0, 0, 0, 1, 1, 1], [0], [0]>} : vector<2x1x128xf32>, vector<2x3x128xf32>, vector<2x1x3xf32> -> vector<2x1x3xf32>
      "tpu.trace_stop"() : () -> ()
      %97 = vector.extract_strided_slice %96 {offsets = [0, 0, 0], sizes = [2, 1, 1], strides = [1, 1, 1]} : vector<2x1x3xf32> to vector<2x1x1xf32>
      %98 = vector.shape_cast %97 : vector<2x1x1xf32> to vector<2x1xf32>
      %99 = vector.extract_strided_slice %96 {offsets = [0, 0, 1], sizes = [2, 1, 1], strides = [1, 1, 1]} : vector<2x1x3xf32> to vector<2x1x1xf32>
      %100 = vector.shape_cast %99 : vector<2x1x1xf32> to vector<2x1xf32>
      %101 = vector.extract_strided_slice %96 {offsets = [0, 0, 2], sizes = [2, 1, 1], strides = [1, 1, 1]} : vector<2x1x3xf32> to vector<2x1x1xf32>
      %102 = vector.shape_cast %101 : vector<2x1x1xf32> to vector<2x1xf32>
      %103 = vector.broadcast %arg4 : i32 to vector<1x8xi32>
      %104 = arith.cmpi eq, %14, %103 : vector<1x8xi32>
      %105 = arith.extui %104 : vector<1x8xi1> to vector<1x8xi32>
      %106 = arith.sitofp %105 : vector<1x8xi32> to vector<1x8xf32>
      %107 = vector.broadcast %98 : vector<2x1xf32> to vector<2x8xf32>
      %108 = vector.broadcast %106 : vector<1x8xf32> to vector<2x8xf32>
      %109 = arith.mulf %107, %108 : vector<2x8xf32>
      %110 = arith.addf %arg7, %109 : vector<2x8xf32>
      %111 = vector.broadcast %100 : vector<2x1xf32> to vector<2x8xf32>
      %112 = vector.broadcast %106 : vector<1x8xf32> to vector<2x8xf32>
      %113 = arith.mulf %111, %112 : vector<2x8xf32>
      %114 = arith.addf %arg8, %113 : vector<2x8xf32>
      %115 = vector.broadcast %102 : vector<2x1xf32> to vector<2x8xf32>
      %116 = vector.broadcast %106 : vector<1x8xf32> to vector<2x8xf32>
      %117 = arith.mulf %115, %116 : vector<2x8xf32>
      %118 = arith.addf %arg9, %117 : vector<2x8xf32>
      %119 = vector.broadcast %98 : vector<2x1xf32> to vector<2x128xf32>
      %120 = arith.subf %2, %119 : vector<2x128xf32>
      %121 = arith.mulf %120, %120 : vector<2x128xf32>
      %122 = vector.broadcast %100 : vector<2x1xf32> to vector<2x128xf32>
      %123 = arith.subf %4, %122 : vector<2x128xf32>
      %124 = arith.mulf %123, %123 : vector<2x128xf32>
      %125 = arith.addf %121, %124 : vector<2x128xf32>
      %126 = vector.broadcast %102 : vector<2x1xf32> to vector<2x128xf32>
      %127 = arith.subf %6, %126 : vector<2x128xf32>
      %128 = arith.mulf %127, %127 : vector<2x128xf32>
      %129 = arith.addf %125, %128 : vector<2x128xf32>
      %130 = arith.minimumf %arg5, %129 : vector<2x128xf32>
      %cst_36 = arith.constant dense<0xFF800000> : vector<2xf32>
      %131 = vector.multi_reduction <maximumf>, %130, %cst_36 [1] : vector<2x128xf32> to vector<2xf32>
      %132 = vector.shape_cast %131 : vector<2xf32> to vector<2x1xf32>
      %133 = vector.broadcast %132 : vector<2x1xf32> to vector<2x128xf32>
      %134 = arith.cmpf oeq, %130, %133 : vector<2x128xf32>
      %cst_37 = arith.constant 1.280000e+02 : f32
      %135 = vector.shape_cast %11 : vector<1x128xf32> to vector<1x128xf32>
      %136 = vector.broadcast %135 : vector<1x128xf32> to vector<2x128xf32>
      %137 = vector.broadcast %cst_37 : f32 to vector<2x128xf32>
      %138 = arith.select %134, %136, %137 : vector<2x128xi1>, vector<2x128xf32>
      %cst_38 = arith.constant dense<0x7F800000> : vector<2xf32>
      %139 = vector.multi_reduction <minimumf>, %138, %cst_38 [1] : vector<2x128xf32> to vector<2xf32>
      %140 = vector.shape_cast %139 : vector<2xf32> to vector<2x1xf32>
      scf.yield %130, %140, %110, %114, %118 : vector<2x128xf32>, vector<2x1xf32>, vector<2x8xf32>, vector<2x8xf32>, vector<2x8xf32>
    }
    %c8_i32_6 = arith.constant 8 : i32
    %23 = arith.mulf %7, %7 : vector<2x1x128xf32>
    %24 = arith.mulf %8, %8 : vector<2x1x128xf32>
    %25 = arith.addf %23, %24 : vector<2x1x128xf32>
    %26 = arith.mulf %9, %9 : vector<2x1x128xf32>
    %27 = arith.addf %25, %26 : vector<2x1x128xf32>
    %28 = arith.mulf %22#2, %22#2 : vector<2x8xf32>
    %29 = arith.mulf %22#3, %22#3 : vector<2x8xf32>
    %30 = arith.addf %28, %29 : vector<2x8xf32>
    %31 = arith.mulf %22#4, %22#4 : vector<2x8xf32>
    %32 = arith.addf %30, %31 : vector<2x8xf32>
    %cst_7 = arith.constant -2.000000e+00 : f32
    %33 = vector.broadcast %cst_7 : f32 to vector<2x8xf32>
    %34 = arith.mulf %33, %22#2 : vector<2x8xf32>
    %35 = vector.shape_cast %34 : vector<2x8xf32> to vector<2x8x1xf32>
    %36 = vector.broadcast %35 : vector<2x8x1xf32> to vector<2x8x128xf32>
    %37 = vector.broadcast %7 : vector<2x1x128xf32> to vector<2x8x128xf32>
    %38 = arith.mulf %36, %37 : vector<2x8x128xf32>
    %cst_8 = arith.constant -2.000000e+00 : f32
    %39 = vector.broadcast %cst_8 : f32 to vector<2x8xf32>
    %40 = arith.mulf %39, %22#3 : vector<2x8xf32>
    %41 = vector.shape_cast %40 : vector<2x8xf32> to vector<2x8x1xf32>
    %42 = vector.broadcast %41 : vector<2x8x1xf32> to vector<2x8x128xf32>
    %43 = vector.broadcast %8 : vector<2x1x128xf32> to vector<2x8x128xf32>
    %44 = arith.mulf %42, %43 : vector<2x8x128xf32>
    %45 = arith.addf %38, %44 : vector<2x8x128xf32>
    %cst_9 = arith.constant -2.000000e+00 : f32
    %46 = vector.broadcast %cst_9 : f32 to vector<2x8xf32>
    %47 = arith.mulf %46, %22#4 : vector<2x8xf32>
    %48 = vector.shape_cast %47 : vector<2x8xf32> to vector<2x8x1xf32>
    %49 = vector.broadcast %48 : vector<2x8x1xf32> to vector<2x8x128xf32>
    %50 = vector.broadcast %9 : vector<2x1x128xf32> to vector<2x8x128xf32>
    %51 = arith.mulf %49, %50 : vector<2x8x128xf32>
    %52 = arith.addf %45, %51 : vector<2x8x128xf32>
    %53 = vector.shape_cast %32 : vector<2x8xf32> to vector<2x8x1xf32>
    %54 = vector.broadcast %53 : vector<2x8x1xf32> to vector<2x8x128xf32>
    %55 = arith.addf %54, %52 : vector<2x8x128xf32>
    %56 = vector.broadcast %27 : vector<2x1x128xf32> to vector<2x8x128xf32>
    %57 = arith.addf %56, %55 : vector<2x8x128xf32>
    %cst_10 = arith.constant 0.000000e+00 : f32
    %58 = vector.broadcast %cst_10 : f32 to vector<2x8x16xf32>
    %cst_11 = arith.constant 0.000000e+00 : f32
    %59 = vector.broadcast %cst_11 : f32 to vector<2x8x16xf32>
    %cst_12 = arith.constant 0.000000e+00 : f32
    %60 = vector.broadcast %cst_12 : f32 to vector<2x8x16xf32>
    %c0_i32_13 = arith.constant 0 : i32
    %c16_i32 = arith.constant 16 : i32
    %61 = arith.addi %c0_i32_13, %c16_i32 : i32
    %c1_i32_14 = arith.constant 1 : i32
    %62:4 = scf.for %arg4 = %c0_i32_13 to %61 step %c1_i32_14 iter_args(%arg5 = %57, %arg6 = %58, %arg7 = %59, %arg8 = %60) -> (vector<2x8x128xf32>, vector<2x8x16xf32>, vector<2x8x16xf32>, vector<2x8x16xf32>)  : i32 {
      %cst_35 = arith.constant dense<0x7F800000> : vector<2x8xf32>
      %90 = vector.multi_reduction <minimumf>, %arg5, %cst_35 [2] : vector<2x8x128xf32> to vector<2x8xf32>
      %91 = vector.shape_cast %90 : vector<2x8xf32> to vector<2x8x1xf32>
      %92 = vector.broadcast %91 : vector<2x8x1xf32> to vector<2x8x128xf32>
      %93 = arith.cmpf oeq, %arg5, %92 : vector<2x8x128xf32>
      %cst_36 = arith.constant 1.280000e+02 : f32
      %94 = vector.shape_cast %13 : vector<1x1x128xf32> to vector<1x1x128xf32>
      %95 = vector.broadcast %94 : vector<1x1x128xf32> to vector<2x8x128xf32>
      %96 = vector.broadcast %cst_36 : f32 to vector<2x8x128xf32>
      %97 = arith.select %93, %95, %96 : vector<2x8x128xi1>, vector<2x8x128xf32>
      %cst_37 = arith.constant dense<0x7F800000> : vector<2x8xf32>
      %98 = vector.multi_reduction <minimumf>, %97, %cst_37 [2] : vector<2x8x128xf32> to vector<2x8xf32>
      %99 = vector.shape_cast %98 : vector<2x8xf32> to vector<2x8x1xf32>
      %100 = vector.broadcast %13 : vector<1x1x128xf32> to vector<2x8x128xf32>
      %101 = vector.broadcast %99 : vector<2x8x1xf32> to vector<2x8x128xf32>
      %102 = arith.cmpf oeq, %100, %101 : vector<2x8x128xf32>
      %103 = arith.extui %102 : vector<2x8x128xi1> to vector<2x8x128xi32>
      %104 = arith.sitofp %103 : vector<2x8x128xi32> to vector<2x8x128xf32>
      "tpu.trace_start"() <{level = 10 : i32, message = "bgn,bcn->bgc"}> : () -> ()
      %cst_38 = arith.constant dense<0.000000e+00> : vector<2x8x3xf32>
      %105 = tpu.matmul %104, %0, %cst_38 {dimension_numbers = #tpu.dot_dimension_numbers<[2], [2], [1], [1], [0, 0, 0, 1, 1, 1], [0], [0]>} : vector<2x8x128xf32>, vector<2x3x128xf32>, vector<2x8x3xf32> -> vector<2x8x3xf32>
      "tpu.trace_stop"() : () -> ()
      %106 = vector.broadcast %arg4 : i32 to vector<1x1x16xi32>
      %107 = arith.cmpi eq, %15, %106 : vector<1x1x16xi32>
      %108 = arith.extui %107 : vector<1x1x16xi1> to vector<1x1x16xi32>
      %109 = arith.sitofp %108 : vector<1x1x16xi32> to vector<1x1x16xf32>
      %110 = vector.extract_strided_slice %105 {offsets = [0, 0, 0], sizes = [2, 8, 1], strides = [1, 1, 1]} : vector<2x8x3xf32> to vector<2x8x1xf32>
      %111 = vector.broadcast %110 : vector<2x8x1xf32> to vector<2x8x16xf32>
      %112 = vector.broadcast %109 : vector<1x1x16xf32> to vector<2x8x16xf32>
      %113 = arith.mulf %111, %112 : vector<2x8x16xf32>
      %114 = arith.addf %arg6, %113 : vector<2x8x16xf32>
      %115 = vector.extract_strided_slice %105 {offsets = [0, 0, 1], sizes = [2, 8, 1], strides = [1, 1, 1]} : vector<2x8x3xf32> to vector<2x8x1xf32>
      %116 = vector.broadcast %115 : vector<2x8x1xf32> to vector<2x8x16xf32>
      %117 = vector.broadcast %109 : vector<1x1x16xf32> to vector<2x8x16xf32>
      %118 = arith.mulf %116, %117 : vector<2x8x16xf32>
      %119 = arith.addf %arg7, %118 : vector<2x8x16xf32>
      %120 = vector.extract_strided_slice %105 {offsets = [0, 0, 2], sizes = [2, 8, 1], strides = [1, 1, 1]} : vector<2x8x3xf32> to vector<2x8x1xf32>
      %121 = vector.broadcast %120 : vector<2x8x1xf32> to vector<2x8x16xf32>
      %122 = vector.broadcast %109 : vector<1x1x16xf32> to vector<2x8x16xf32>
      %123 = arith.mulf %121, %122 : vector<2x8x16xf32>
      %124 = arith.addf %arg8, %123 : vector<2x8x16xf32>
      %cst_39 = arith.constant 1.000000e+30 : f32
      %125 = vector.broadcast %cst_39 : f32 to vector<2x8x128xf32>
      %126 = arith.mulf %104, %125 : vector<2x8x128xf32>
      %127 = arith.addf %arg5, %126 : vector<2x8x128xf32>
      scf.yield %127, %114, %119, %124 : vector<2x8x128xf32>, vector<2x8x16xf32>, vector<2x8x16xf32>, vector<2x8x16xf32>
    }
    %c16_i32_15 = arith.constant 16 : i32
    %63 = vector.shape_cast %22#2 : vector<2x8xf32> to vector<2x8x1xf32>
    %64 = vector.broadcast %63 : vector<2x8x1xf32> to vector<2x8x16xf32>
    %65 = arith.subf %62#1, %64 : vector<2x8x16xf32>
    %66 = vector.shape_cast %22#3 : vector<2x8xf32> to vector<2x8x1xf32>
    %67 = vector.broadcast %66 : vector<2x8x1xf32> to vector<2x8x16xf32>
    %68 = arith.subf %62#2, %67 : vector<2x8x16xf32>
    %69 = vector.shape_cast %22#4 : vector<2x8xf32> to vector<2x8x1xf32>
    %70 = vector.broadcast %69 : vector<2x8x1xf32> to vector<2x8x16xf32>
    %71 = arith.subf %62#3, %70 : vector<2x8x16xf32>
    %c0_16 = arith.constant 0 : index
    %c0_17 = arith.constant 0 : index
    %c0_18 = arith.constant 0 : index
    %c0_19 = arith.constant 0 : index
    %72 = vector.load %arg2[%c0_16, %c0_17, %c0_18, %c0_19] : memref<2x3x8x16xf32, #tpu.memory_space<vmem>>, vector<2x1x8x16xf32>
    %73 = vector.shape_cast %72 : vector<2x1x8x16xf32> to vector<2x8x16xf32>
    %74 = vector.shape_cast %65 : vector<2x8x16xf32> to vector<2x1x8x16xf32>
    tpu.vector_store %arg2[%c0_16, %c0_17, %c0_18, %c0_19], %74 {strides = array<i32>} : memref<2x3x8x16xf32, #tpu.memory_space<vmem>>, vector<2x1x8x16xf32>,
    %c0_20 = arith.constant 0 : index
    %c1 = arith.constant 1 : index
    %c0_21 = arith.constant 0 : index
    %c0_22 = arith.constant 0 : index
    %75 = vector.load %arg2[%c0_20, %c1, %c0_21, %c0_22] : memref<2x3x8x16xf32, #tpu.memory_space<vmem>>, vector<2x1x8x16xf32>
    %76 = vector.shape_cast %75 : vector<2x1x8x16xf32> to vector<2x8x16xf32>
    %77 = vector.shape_cast %68 : vector<2x8x16xf32> to vector<2x1x8x16xf32>
    tpu.vector_store %arg2[%c0_20, %c1, %c0_21, %c0_22], %77 {strides = array<i32>} : memref<2x3x8x16xf32, #tpu.memory_space<vmem>>, vector<2x1x8x16xf32>,
    %c0_23 = arith.constant 0 : index
    %c2 = arith.constant 2 : index
    %c0_24 = arith.constant 0 : index
    %c0_25 = arith.constant 0 : index
    %78 = vector.load %arg2[%c0_23, %c2, %c0_24, %c0_25] : memref<2x3x8x16xf32, #tpu.memory_space<vmem>>, vector<2x1x8x16xf32>
    %79 = vector.shape_cast %78 : vector<2x1x8x16xf32> to vector<2x8x16xf32>
    %80 = vector.shape_cast %71 : vector<2x8x16xf32> to vector<2x1x8x16xf32>
    tpu.vector_store %arg2[%c0_23, %c2, %c0_24, %c0_25], %80 {strides = array<i32>} : memref<2x3x8x16xf32, #tpu.memory_space<vmem>>, vector<2x1x8x16xf32>,
    %c0_26 = arith.constant 0 : index
    %c0_27 = arith.constant 0 : index
    %c0_28 = arith.constant 0 : index
    %81 = vector.load %arg3[%c0_26, %c0_27, %c0_28] : memref<2x3x8xf32, #tpu.memory_space<vmem>>, vector<2x1x8xf32>
    %82 = vector.shape_cast %81 : vector<2x1x8xf32> to vector<2x8xf32>
    %83 = vector.shape_cast %22#2 : vector<2x8xf32> to vector<2x1x8xf32>
    tpu.vector_store %arg3[%c0_26, %c0_27, %c0_28], %83 {strides = array<i32>} : memref<2x3x8xf32, #tpu.memory_space<vmem>>, vector<2x1x8xf32>,
    %c0_29 = arith.constant 0 : index
    %c1_30 = arith.constant 1 : index
    %c0_31 = arith.constant 0 : index
    %84 = vector.load %arg3[%c0_29, %c1_30, %c0_31] : memref<2x3x8xf32, #tpu.memory_space<vmem>>, vector<2x1x8xf32>
    %85 = vector.shape_cast %84 : vector<2x1x8xf32> to vector<2x8xf32>
    %86 = vector.shape_cast %22#3 : vector<2x8xf32> to vector<2x1x8xf32>
    tpu.vector_store %arg3[%c0_29, %c1_30, %c0_31], %86 {strides = array<i32>} : memref<2x3x8xf32, #tpu.memory_space<vmem>>, vector<2x1x8xf32>,
    %c0_32 = arith.constant 0 : index
    %c2_33 = arith.constant 2 : index
    %c0_34 = arith.constant 0 : index
    %87 = vector.load %arg3[%c0_32, %c2_33, %c0_34] : memref<2x3x8xf32, #tpu.memory_space<vmem>>, vector<2x1x8xf32>
    %88 = vector.shape_cast %87 : vector<2x1x8xf32> to vector<2x8xf32>
    %89 = vector.shape_cast %22#4 : vector<2x8xf32> to vector<2x1x8xf32>
    tpu.vector_store %arg3[%c0_32, %c2_33, %c0_34], %89 {strides = array<i32>} : memref<2x3x8xf32, #tpu.memory_space<vmem>>, vector<2x1x8xf32>,
    return
  }
  func.func @transform_0(%arg0: i32) -> (i32, i32, i32) {
    %c0_i32 = arith.constant 0 : i32
    %c0_i32_0 = arith.constant 0 : i32
    %c0_i32_1 = arith.constant 0 : i32
    return %arg0, %c0_i32, %c0_i32_0 : i32, i32, i32
  }
  func.func @transform_1(%arg0: i32) -> (i32, i32, i32, i32) {
    %c0_i32 = arith.constant 0 : i32
    %c0_i32_0 = arith.constant 0 : i32
    %c0_i32_1 = arith.constant 0 : i32
    %c0_i32_2 = arith.constant 0 : i32
    return %arg0, %c0_i32, %c0_i32_0, %c0_i32_1 : i32, i32, i32, i32
  }
  func.func @transform_2(%arg0: i32) -> (i32, i32, i32) {
    %c0_i32 = arith.constant 0 : i32
    %c0_i32_0 = arith.constant 0 : i32
    %c0_i32_1 = arith.constant 0 : i32
    return %arg0, %c0_i32, %c0_i32_0 : i32, i32, i32
  }
}

</mosaic_0001>

<bundles_post_ra>
// kernel: group_forward.1
= control target key start
LH: loop header
LB: loop body
LE: loop exit
PB: predicated region body
PF: predicated region fallthrough
CT: control target
= control target key end

     0   :  { %8 = vsyncpa [#allocation3], 0  ;;  %v13_v2 = vlaneseq  ;;  %v1227_v5 = vmov 0.0   ;;  %v1229_v6 = vmov 0.0   ;;  %v1231_v7 = vmov 0.0   ;;  %s1506_s0 = inlined_call_operand.vmem [shape: f32[2,3,128], index: 0, kind: input, shape index: {}]   ;;  %s1507_s1 = inlined_call_operand.hbm [shape: f32[2,3,8,16], index: 1, kind: output, shape index: {0}]   ;;  %s1508_s2 = inlined_call_operand.vmem [shape: f32[2,3,8], index: 2, kind: output, shape index: {1}]  }
   0x1   :  { %v1214_v0 = vld [vmem:[%s1506_s0] sm:$0x7]  ;;  %v1219_v1 = vld [vmem:[%s1506_s0 + $0x4] sm:$0x7]  ;;  %v1233_v8 = vmov 0.0   ;;  %v1235_v9 = vmov 0.0  }
   0x2   :  { %v1222_v3 = vand.u32 127, %v13_v2  ;;  %v1237_v10 = vmov 0.0   ;;  %v1239_v11 = vmov 0.0   ;;  %v1241_v12 = vmov 1e+30   ;;  %s1245_s0 = smov 0  }
   0x3   :  { %v1243_v13 = vmov 1e+30  }
   0x4   :  { %v1225_v4 = vcvt.s32.f32 %v1222_v3 }
   0x5 LB: > { %v1272_v14 = vshrl.u32 %v13_v2, 7  ;;  %v1181_v15 = vmov 0.0   ;;  %vm1182_vm0 = vmmov 0   ;;  %v1183_v20 = vmov 2   ;;  %s1143_s0 = sphi %s1245_s0, %s21_s0   ;;  %v1139_v13 = vphi %v1243_v13, %v266_v13   ;;  %v1135_v12 = vphi %v1241_v12, %v267_v12   ;;  %v1131_v11 = vphi %v1239_v11, %v293_v11   ;;  %v1127_v10 = vphi %v1237_v10, %v1520_v10   ;;  %v1123_v9 = vphi %v1235_v9, %v1519_v9   ;;  %v1119_v8 = vphi %v1233_v8, %v1518_v8   ;;  %v1115_v7 = vphi %v1231_v7, %v1517_v7   ;;  %v1111_v6 = vphi %v1229_v6, %v1516_v6   ;;  %v1107_v5 = vphi %v1227_v5, %v1515_v5  }
   0x6   : > { %814 = vmatprep.subr.mxu1 %v1181_v15  ;;  %809 = vmatprep.subr.mxu0 %v1181_v15  ;;  %v1184_v21 = vmov 1   ;;  %v1185_v22 = vmov 1.0   ;;  %v1186_v27 = vmov 0   ;;  %v188_v28 = vstv %s1143_s0  ;;  %s21_s0 = sadd.s32 1, %s1143_s0  }
   0x7   : > { %815 = vmatpush3.xpose.msra.mxu1 %v1219_v1  ;;  %816 = vmatprep.mubr.msk.f32.mxu1 %vm1182_vm0, %v1181_v15  ;;  %v1276_v16 = vsub.s32 1, %v1272_v14  ;;  %v1279_v17 = vsub.s32 0, %v1272_v14  ;;  %vm189_vm3 = vcmp.eq.s32.totalorder %v1222_v3, %v188_v28  ;;  %vm271_vm4 = vcmask 1041409   ;;  %p18_p0 = scmp.ge.s32.totalorder %s21_s0, 8  }
   0x8   : > { %810 = vmatpush3.xpose.msra.mxu0 %v1214_v0  ;;  %811 = vmatprep.mubr.msk.f32.mxu0 %vm1182_vm0, %v1181_v15  ;;  %v795_v29 = vsel %vm189_vm3, 1.0, %v1181_v15  ;;  %vm274_vm5 = vcmask 1041408   ;;  %s1400_s13 = smov (%p18_p0), 0  }
   0x9   : > { %v39_v18 = vrot.slane %v1131_v11, %v1276_v16  ;;  %v35_v19 = vrot.slane %v1131_v11, %v1279_v17  ;;  %997 = vset.pattern.permute.xlu1 %v1183_v20  ;;  %996 = vset.pattern.permute.xlu0 %v1184_v21 }
   0xb   : > { %vm43_vm1 = vcmp.eq.f32.partialorder %v1225_v4, %v39_v18  ;;  %vm42_vm2 = vcmp.eq.f32.partialorder %v1225_v4, %v35_v19 }
   0xc   : > { %817 = vmatmul.mubr.msk.f32.vlgmr.msra.gmra.mrb[0].mxu1 %vm43_vm1, %v1185_v22  ;;  %812 = vmatmul.mubr.msk.f32.vlgmr.msra.gmra.mrb[0].mxu0 %vm42_vm2, %v1185_v22 }
  0xdf   : > { %v184_v23 = vpop.f32.mrb[0].mxu1  ;;  %v114_v24 = vpop.f32.mrb[0].mxu0 }
  0xe0   : > { %223 = vperm.xlu1 %997, %v184_v23   ;;  %211 = vperm.xlu0 %996, %v184_v23   ;;  %v818_v25 = vpop.f32.mrb[1].mxu1  ;;  %v813_v26 = vpop.f32.mrb[1].mxu0 }
  0xe4   : > { %998 = vset.pattern.permute.xlu1 %v1186_v27  ;;  %207 = vperm.xlu0 %996, %v114_v24  }
  0xe5   : > { %199 = vperm.xlu1 %998, %v184_v23  }
  0xe8   : > { %999 = vset.pattern.permute.xlu0 %v1183_v20 }
  0xe9   : > { %194 = vperm.xlu1 %998, %v114_v24   ;;  %219 = vperm.xlu0 %999, %v114_v24  }
 0x15f   : > { %v224_v30 = vpop.permute.xlu1 %223  ;;  %v212_v31 = vpop.permute.xlu0 %211 }
 0x160   : > { %v227_v32 = vmul.f32 %v795_v29, %v224_v30  ;;  %v251_v33 = vrot.slane %v224_v30, 6  ;;  %v215_v34 = vmul.f32 %v795_v29, %v212_v31  ;;  %v235_v35 = vrot.slane %v212_v31, 7 }
 0x162   : > { %v1288_v5 = vadd.f32 %v1107_v5, %v227_v32   ;;  %v255_v37 = vsub.f32 %v1219_v1, %v251_v33  ;;  %v1291_v7 = vadd.f32 %v1115_v7, %v215_v34   ;;  %v239_v39 = vsub.f32 %v1219_v1, %v235_v35 }
 0x163   : > { %v208_v40 = vpop.permute.xlu0 %207 }
 0x164   : > { %v1509_v36 = vmov %v1288_v5  ;;  %v1510_v38 = vmov %v1291_v7  ;;  %v241_v41 = vmul.f32 %v239_v39, %v239_v39  ;;  %v214_v42 = vmul.f32 %v795_v29, %v208_v40  ;;  %v200_v44 = vpop.permute.xlu1 %199 }
 0x165   : > { %v234_v43 = vrot.slane %v208_v40, 7  ;;  %v203_v45 = vmul.f32 %v795_v29, %v200_v44  ;;  %v231_v46 = vsub.f32 %v1219_v1, %v200_v44  ;;  %v257_v47 = vmul.f32 %v255_v37, %v255_v37 }
 0x166   : > { %v245_v48 = vrot.slane %v241_v41, 1  ;;  %v1296_v8 = vadd.f32 %v1119_v8, %v214_v42   ;;  %v347_v30 = vmul.f32 (%p18_p0), -2.0, %v1510_v38  ;;  %v313_v33 = vmul.f32 (%p18_p0), %v1510_v38, %v1510_v38 }
 0x167   : > { %v238_v50 = vsub.f32 %v1214_v0, %v234_v43  ;;  %v1300_v9 = vadd.f32 %v1123_v9, %v203_v45   ;;  %v233_v52 = vmul.f32 %v231_v46, %v231_v46  ;;  %v261_v60 = vrot.slane %v257_v47, 2 }
 0x168   : > { %v1511_v49 = vmov %v1296_v8  ;;  %v195_v54 = vpop.permute.xlu1 %194  ;;  %v220_v55 = vpop.permute.xlu0 %219  ;;  %v375_v35 = vmul.f32 (%p18_p0), -2.0, %v1509_v36  ;;  %v358_v2 = vrot.slane (%p18_p0), %v347_v30, %v1279_v17  ;;  %v317_v39 = vmul.f32 (%p18_p0), %v1509_v36, %v1509_v36 }
 0x169   : > { %v1512_v51 = vmov %v1300_v9  ;;  %v240_v53 = vmul.f32 %v238_v50, %v238_v50  ;;  %v249_v56 = vadd.f32 %v245_v48, %v233_v52  ;;  %v202_v57 = vmul.f32 %v795_v29, %v195_v54 }
 0x16a   : > { %v230_v58 = vsub.f32 %v1214_v0, %v195_v54  ;;  %v226_v59 = vmul.f32 %v795_v29, %v220_v55  ;;  %v250_v61 = vrot.slane %v220_v55, 6  ;;  %v346_v28 = vmul.f32 (%p18_p0), -2.0, %v1511_v49 }
 0x16b   : > { %v1304_v10 = vadd.f32 %v1127_v10, %v202_v57   ;;  %v244_v5 = vrot.slane %v240_v53, 1  ;;  %v265_v7 = vadd.f32 %v261_v60, %v249_v56  ;;  %v321_v31 = vmul.f32 (%p18_p0), -2.0, %v1512_v51 }
 0x16c   : > { %v1307_v6 = vadd.f32 %v1111_v6, %v226_v59   ;;  %v232_v8 = vmul.f32 %v230_v58, %v230_v58  ;;  %v254_v9 = vsub.f32 %v1214_v0, %v250_v61  ;;  %v311_v32 = vmul.f32 (%p18_p0), %v1512_v51, %v1512_v51 }
 0x16d   : > { %v1513_v62 = vmov %v1304_v10  ;;  %v267_v12 = vmin.f32 %v1135_v12, %v265_v7   ;;  %v1517_v7 = vmov %v1510_v38  ;;  %v351_v34 = vrot.slane (%p18_p0), %v346_v28, %v1279_v17 }
 0x16e   : > { %v1514_v63 = vmov %v1307_v6  ;;  %v256_v11 = vmul.f32 %v254_v9, %v254_v9  ;;  %v248_v15 = vadd.f32 %v244_v5, %v232_v8  ;;  %v1515_v5 = vmov %v1509_v36 }
 0x16f   : > { %v270_v20 = vrot.slane %v267_v12, 7  ;;  %v1518_v8 = vmov %v1511_v49  ;;  %v1519_v9 = vmov %v1512_v51  ;;  %v320_v29 = vmul.f32 (%p18_p0), -2.0, %v1513_v62 }
 0x170   : > { %v260_v18 = vrot.slane %v256_v11, 2  ;;  %v315_v37 = vadd.f32 (%p18_p0), %v313_v33, %v311_v32  ;;  %v374_v40 = vmul.f32 (%p18_p0), -2.0, %v1514_v63  ;;  %v310_v41 = vmul.f32 (%p18_p0), %v1513_v62, %v1513_v62 }
 0x171   :  { %v312_v42 = vmul.f32 (%p18_p0), %v1511_v49, %v1511_v49  ;;  %v316_v43 = vmul.f32 (%p18_p0), %v1514_v63, %v1514_v63  ;;  %v386_v45 = vrot.slane (%p18_p0), %v375_v35, %v1279_v17  ;;  %v295_v53 = vmul.f32 (%p18_p0), %v1219_v1, %v1219_v1 }
 0x172   : > { %v264_v19 = vadd.f32 %v260_v18, %v248_v15  ;;  %v379_v46 = vrot.slane (%p18_p0), %v374_v40, %v1279_v17  ;;  %v319_v47 = vadd.f32 (%p18_p0), %v317_v39, %v315_v37  ;;  %v294_v54 = vmul.f32 (%p18_p0), %v1214_v0, %v1214_v0 }
 0x173   :  { %v314_v44 = vadd.f32 (%p18_p0), %v312_v42, %v310_v41  ;;  %v299_v55 = vrot.slane (%p18_p0), %v295_v53, 1  ;;  %v392_v59 = vsub.s32 (%p18_p0), 2, %v1272_v14  ;;  %v365_v60 = vrot.slane (%p18_p0), %v1214_v0, %v1276_v16 }
 0x174   : > { %v266_v13 = vmin.f32 %v1139_v13, %v264_v19   ;;  %v412_v50 = vrot.slane (%p18_p0), %v319_v47, %v1279_v17  ;;  %v298_v56 = vrot.slane (%p18_p0), %v294_v54, 1  ;;  %v339_v61 = vrot.slane (%p18_p0), %v1214_v0, %v1279_v17 }
 0x175   :  { %v318_v48 = vadd.f32 (%p18_p0), %v316_v43, %v314_v44  ;;  %v369_v5 = vrot.slane (%p18_p0), %v1219_v1, %v1276_v16  ;;  %v343_v7 = vrot.slane (%p18_p0), %v1219_v1, %v1279_v17  ;;  %v303_v8 = vadd.f32 (%p18_p0), %v299_v55, %v295_v53 }
 0x176   : > { %v272_v10 = vsel %vm271_vm4, %v270_v20, %v266_v13  ;;  %v305_v9 = vrot.slane (%p18_p0), %v295_v53, 2  ;;  %v304_v15 = vrot.slane (%p18_p0), %v294_v54, 2  ;;  %v397_v14 = vrot.slane (%p18_p0), %v1219_v1, %v392_v59 }
 0x177   : > { %v275_v21 = vsel %vm274_vm5, %v272_v10, -inf  ;;  %v1520_v10 = vmov %v1513_v62  ;;  %v405_v52 = vrot.slane (%p18_p0), %v318_v48, %v1279_v17  ;;  %v393_v20 = vrot.slane (%p18_p0), %v1214_v0, %v392_v59 }
 0x178   : > { %276 = vmax.xlane.f32.xlu1 %v275_v21  ;;  %v1384_v39 = vmov (%p18_p0), 0.0   ;;  %v1386_v40 = vmov (%p18_p0), 0.0   ;;  %v1388_v41 = vmov (%p18_p0), 0.0   ;;  %v1390_v42 = vmov (%p18_p0), 0.0  }
 0x179   :  { %v1392_v43 = vmov (%p18_p0), 0.0   ;;  %v1394_v44 = vmov (%p18_p0), 0.0  }
 0x189   :  { %353 = vbcast.lane.b32.xlu1 (%p18_p0), %v351_v34, 256 }
 0x18d   :  { %360 = vbcast.lane.b32.xlu1 (%p18_p0), %v358_v2, 256 }
 0x191   :  { %388 = vbcast.lane.b32.xlu1 (%p18_p0), %v386_v45, 256 }
 0x195   :  { %414 = vbcast.lane.b32.xlu1 (%p18_p0), %v412_v50, 256 }
 0x205   : > { %v277_v6 = vpop.xlane.xlu1 %276 }
 0x206   : > { %v279_v22 = vrot.slane %v277_v6, 1  ;;  %vm282_vm6 = vcmp.eq.f32.partialorder %v266_v13, %v277_v6  ;;  %v1516_v6 = vmov %v1514_v63  ;;  %v325_v13 = vrot.slane (%p18_p0), %v320_v29, %v1279_v17 }
 0x207   : > { %v284_v25 = vsel %vm282_vm6, %v1225_v4, 128.0 }
 0x208   : > { %vm283_vm7 = vcmp.eq.f32.partialorder %v267_v12, %v279_v22  ;;  %v332_v12 = vrot.slane (%p18_p0), %v321_v31, %v1279_v17 }
 0x209   : > { %v285_v23 = vsel %vm283_vm7, %v1225_v4, 128.0  ;;  %v354_v57 = vpop.permute.xlu1 (%p18_p0), %353 }
 0x20a   : > { %v288_v24 = vrot.slane %v285_v23, 7  ;;  %v370_v10 = vmul.f32 (%p18_p0), %v365_v60, %v354_v57  ;;  %v309_v23 = vadd.f32 (%p18_p0), %v305_v9, %v303_v8 }
 0x20c   : > { %v289_v26 = vsel %vm271_vm4, %v288_v24, %v284_v25  ;;  %v425_v31 = vrot.slane (%p18_p0), %v309_v23, %v1279_v17 }
 0x20d   : > { %v291_v27 = vsel %vm274_vm5, %v289_v26, inf  ;;  %v361_v18 = vpop.permute.xlu1 (%p18_p0), %360 }
 0x20e   : > { %292 = vmin.xlane.f32.xlu0 %v291_v27  ;;  %v371_v6 = vmul.f32 (%p18_p0), %v369_v5, %v361_v18 }
 0x211   :  { %v389_v16 = vpop.permute.xlu1 (%p18_p0), %388 }
 0x212   :  { %v399_v28 = vmul.f32 (%p18_p0), %v397_v14, %v389_v16 }
 0x215   :  { %v415_v34 = vpop.permute.xlu1 (%p18_p0), %414 }
 0x224   :  { %327 = vbcast.lane.b32.xlu0 (%p18_p0), %v325_v13, 256 }
 0x228   :  { %334 = vbcast.lane.b32.xlu0 (%p18_p0), %v332_v12, 256 }
 0x22c   :  { %381 = vbcast.lane.b32.xlu0 (%p18_p0), %v379_v46, 256 }
 0x230   :  { %407 = vbcast.lane.b32.xlu0 (%p18_p0), %v405_v52, 256 }
 0x295   :  { %20 = sbr.rel (!%p18_p0) target bundleno = 5 (0x5), region = 48 }
 0x29b   : > { %v293_v11 = vpop.xlane.xlu0 %292  }
 0x29c   :  { %v302_v11 = vadd.f32 %v298_v56, %v294_v54 }
 0x29e   :  { %v308_v24 = vadd.f32 %v304_v15, %v302_v11 }
 0x29f   :  { %v328_v58 = vpop.permute.xlu0 %327 }
 0x2a0   :  { %v344_v21 = vmul.f32 %v339_v61, %v328_v58  ;;  %v421_v33 = vrot.slane %v308_v24, %v1279_v17 }
 0x2a2   :  { %v372_v26 = vadd.f32 %v370_v10, %v344_v21 }
 0x2a3   :  { %v335_v19 = vpop.permute.xlu0 %334 }
 0x2a4   :  { %v345_v22 = vmul.f32 %v343_v7, %v335_v19 }
 0x2a6   :  { %v373_v27 = vadd.f32 %v371_v6, %v345_v22 }
 0x2a7   :  { %v382_v25 = vpop.permute.xlu0 %381 }
 0x2a8   :  { %v398_v29 = vmul.f32 %v393_v20, %v382_v25  ;;  %v401_v30 = vadd.f32 %v399_v28, %v373_v27 }
 0x2aa   :  { %v400_v32 = vadd.f32 %v398_v29, %v372_v26  ;;  %v417_v35 = vadd.f32 %v415_v34, %v401_v30 }
 0x2ab   :  { %v408_v13 = vpop.permute.xlu0 %407 }
 0x2ac   :  { %v416_v2 = vadd.f32 %v408_v13, %v400_v32  ;;  %v427_v12 = vadd.f32 %v425_v31, %v417_v35  }
 0x2ae   :  { %v426_v37 = vadd.f32 %v421_v33, %v416_v2  }
 0x2af LB: > { %442 = vmin.xlane.f32.xlu0 %v1175_v37  ;;  %v1187_v45 = vmov 0.0   ;;  %vm1188_vm10 = vmmov 0   ;;  %v1189_v52 = vmov 0   ;;  %v1190_v55 = vmov 1.0   ;;  %s1179_s13 = sphi %s1400_s13, %s433_s13   ;;  %v1175_v37 = vphi %v426_v37, %v644_v37   ;;  %v1171_v12 = vphi %v427_v12, %v645_v12   ;;  %v1167_v44 = vphi %v1394_v44, %v1526_v44   ;;  %v1163_v43 = vphi %v1392_v43, %v1525_v43   ;;  %v1159_v42 = vphi %v1390_v42, %v1524_v42   ;;  %v1155_v41 = vphi %v1388_v41, %v1523_v41   ;;  %v1151_v40 = vphi %v1386_v40, %v1522_v40   ;;  %v1147_v39 = vphi %v1384_v39, %v1521_v39  }
 0x2b0   : > { %819 = vmatprep.subr.mxu0 %v1187_v45  ;;  %824 = vmatprep.subr.mxu1 %v1187_v45  ;;  %v1191_v8 = vmov 2   ;;  %v1192_v9 = vmov 1   ;;  %v600_v11 = vstv %s1179_s13  ;;  %s433_s13 = sadd.s32 1, %s1179_s13  }
 0x2b1   : > { %820 = vmatpush3.xpose.msra.mxu0 %v1214_v0  ;;  %825 = vmatpush3.xpose.msra.mxu1 %v1219_v1  ;;  %vm601_vm13 = vcmp.eq.s32.totalorder %v1222_v3, %v600_v11  ;;  %p430_p1 = scmp.ge.s32.totalorder %s433_s13, 16  }
 0x2b2   : > { %821 = vmatprep.mubr.msk.f32.mxu0 %vm1188_vm10, %v1187_v45  ;;  %826 = vmatprep.mubr.msk.f32.mxu1 %vm1188_vm10, %v1187_v45  ;;  %v800_v15 = vsel %vm601_vm13, 1.0, %v1187_v45  ;;  %v665_v32 = vrot.slane (%p430_p1), %v1511_v49, %v1279_v17  ;;  %v649_v33 = vrot.slane (%p430_p1), %v1513_v62, %v1279_v17  ;;  %vm703_vm14 = vcmask (%p430_p1), 57344  }
 0x2b3   : > { %444 = vmin.xlane.f32.xlu0 %v1171_v12  ;;  %1001 = vset.pattern.permute.xlu1 %v1189_v52  ;;  %v672_v34 = vrot.slane (%p430_p1), %v1510_v38, %v1279_v17  ;;  %v656_v13 = vrot.slane (%p430_p1), %v1512_v51, %v1279_v17  ;;  %704 = vst.msk [vmem:[%s1508_s2] sm:$0x1] (%p430_p1), %vm703_vm14, %v1513_v62  ;;  %705 = vst.msk [vmem:[%s1508_s2 + $0x4] sm:$0x1] (%p430_p1), %vm703_vm14, %v1512_v51  ;;  %vm694_vm15 = vcmask (%p430_p1), 130048  }
 0x2b4   : > { %1000 = vset.pattern.permute.xlu0 %v1189_v52  ;;  %706 = vst.msk [vmem:[%s1508_s2 + $0x1] sm:$0x1] (%p430_p1), %vm703_vm14, %v1511_v49  ;;  %707 = vst.msk [vmem:[%s1508_s2 + $0x5] sm:$0x1] (%p430_p1), %vm703_vm14, %v1510_v38  ;;  %v688_v0 = vrot.slane (%p430_p1), %v1509_v36, %v1279_v17  ;;  %v681_v1 = vrot.slane (%p430_p1), %v1514_v63, %v1279_v17 }
 0x2b5   :  { %708 = vst.msk [vmem:[%s1508_s2 + $0x2] sm:$0x1] (%p430_p1), %vm703_vm14, %v1514_v63  ;;  %709 = vst.msk [vmem:[%s1508_s2 + $0x6] sm:$0x1] (%p430_p1), %vm703_vm14, %v1509_v36  ;;  %s1193_s2 = smov (%p430_p1), [#allocation2]  }
 0x2b6   :  { %s715_s26 = sshll.u32 (%p430_p1), %s1193_s2, 4  ;;  %s716_s26 = int_to_ptr.vmem [resolvable:$true] %s715_s26 }
 0x2b7   :  { %s1005_s27 = scalar_lea.vmem (%p430_p1), %s716_s26, 768  ;;  %p1010_p3 = scmp.lt.s32.totalorder (%p430_p1), %s716_s26, %s716_s26 }
 0x2b8   :  { %p1006_p2 = scmp.ne.s32.totalorder (%p430_p1), %s716_s26, %s1005_s27  ;;  %p1011_p4 = scmp.lt.s32.totalorder (%p430_p1), %s1005_s27, %s1005_s27 }
 0x2ba   :  { %p1012_p5 = por (%p430_p1), %p1011_p4, %p1010_p3 }
 0x2bc   :  { %p1013_p6 = pnand (%p430_p1), %p1012_p5, %p1006_p2 }
 0x33c   : > { %v443_v46 = vpop.xlane.xlu0 %442 }
 0x33d   : > { %vm446_vm8 = vcmp.eq.f32.partialorder %v1175_v37, %v443_v46 }
 0x33e   : > { %v448_v47 = vsel %vm446_vm8, %v1225_v4, 128.0 }
 0x33f   : > { %450 = vmin.xlane.f32.xlu1 %v448_v47 }
 0x340   : > { %v445_v48 = vpop.xlane.xlu0 %444 }
 0x341   : > { %vm447_vm9 = vcmp.eq.f32.partialorder %v1171_v12, %v445_v48 }
 0x342   : > { %v449_v50 = vsel %vm447_vm9, %v1225_v4, 128.0 }
 0x343   : > { %452 = vmin.xlane.f32.xlu1 %v449_v50 }
 0x3cc   : > { %v451_v53 = vpop.xlane.xlu1 %450 }
 0x3cd   : > { %vm454_vm11 = vcmp.eq.f32.partialorder %v1225_v4, %v451_v53 }
 0x3ce   : > { %v796_v54 = vsel %vm454_vm11, 1.0, %v1187_v45  ;;  %822 = vmatmul.mubr.msk.f32.vlgmr.msra.gmra.mrb[0].mxu0 %vm454_vm11, %v1190_v55 }
 0x3cf   : > { %v642_v56 = vmul.f32 1e+30, %v796_v54 }
 0x3d0   : > { %v453_v57 = vpop.xlane.xlu1 %452 }
 0x3d1   : > { %v644_v37 = vadd.f32 %v1175_v37, %v642_v56   ;;  %vm455_vm12 = vcmp.eq.f32.partialorder %v1225_v4, %v453_v57 }
 0x3d2   : > { %v797_v58 = vsel %vm455_vm12, 1.0, %v1187_v45  ;;  %827 = vmatmul.mubr.msk.f32.vlgmr.msra.gmra.mrb[0].mxu1 %vm455_vm12, %v1190_v55 }
 0x3d3   : > { %v643_v59 = vmul.f32 1e+30, %v797_v58 }
 0x3d5   : > { %v645_v12 = vadd.f32 %v1171_v12, %v643_v59  }
 0x4a1   : > { %v526_v60 = vpop.f32.mrb[0].mxu0 }
 0x4a2   : > { %v823_v61 = vpop.f32.mrb[1].mxu0  ;;  %606 = vperm.xlu0 %1000, %v526_v60  }
 0x4a5   : > { %v596_v5 = vpop.f32.mrb[0].mxu1 }
 0x4a6   : > { %611 = vperm.xlu1 %1001, %v596_v5   ;;  %v828_v7 = vpop.f32.mrb[1].mxu1  ;;  %1004 = vset.pattern.permute.xlu0 %v1191_v8 }
 0x4a7   :  { %651 = vbcast.lane.b32.xlu0 (%p430_p1), %v649_v33, 256 }
 0x4aa   : > { %1002 = vset.pattern.permute.xlu1 %v1192_v9 }
 0x4ab   : > { %619 = vperm.xlu1 %1002, %v526_v60   ;;  %658 = vbcast.lane.b32.xlu0 (%p430_p1), %v656_v13, 256 }
 0x4af   : > { %623 = vperm.xlu1 %1002, %v596_v5   ;;  %683 = vbcast.lane.b32.xlu0 (%p430_p1), %v681_v1, 256 }
 0x4b3   : > { %1003 = vset.pattern.permute.xlu1 %v1191_v8 }
 0x4b4   : > { %631 = vperm.xlu1 %1003, %v526_v60  }
 0x4b8   : > { %635 = vperm.xlu1 %1003, %v596_v5  }
 0x4bc   :  { %667 = vbcast.lane.b32.xlu1 (%p430_p1), %v665_v32, 256 }
 0x4c0   :  { %674 = vbcast.lane.b32.xlu1 (%p430_p1), %v672_v34, 256 }
 0x4c4   :  { %690 = vbcast.lane.b32.xlu1 (%p430_p1), %v688_v0, 256 }
 0x521   : > { %v607_v18 = vpop.permute.xlu0 %606 }
 0x522   : > { %v614_v19 = vmul.f32 %v800_v15, %v607_v18 }
 0x524   : > { %v616_v14 = vadd.f32 %v1167_v44, %v614_v19  }
 0x525   : > { %v612_v20 = vpop.permute.xlu1 %611  ;;  %v652_v4 = vpop.permute.xlu0 (%p430_p1), %651 }
 0x526   : > { %v615_v10 = vmul.f32 %v800_v15, %v612_v20  ;;  %v1526_v44 = vmov %v616_v14  ;;  %v660_v49 = vsub.f32 (%p430_p1), %v616_v14, %v652_v4 }
 0x528   : > { %v617_v21 = vadd.f32 %v1163_v43, %v615_v10   ;;  %695 = vst.msk [vmem:[#allocation2] sm:$0xff] (%p430_p1), %vm694_vm15, %v660_v49 }
 0x529   :  { %v659_v62 = vpop.permute.xlu0 (%p430_p1), %658 }
 0x52a   : > { %v620_v6 = vpop.permute.xlu1 %619  ;;  %v1525_v43 = vmov %v617_v21  ;;  %v661_v2 = vsub.f32 (%p430_p1), %v617_v21, %v659_v62 }
 0x52b   : > { %v626_v22 = vmul.f32 %v800_v15, %v620_v6 }
 0x52c   :  { %696 = vst.msk [vmem:[#allocation2 + $0x18] sm:$0xff] (%p430_p1), %vm694_vm15, %v661_v2 }
 0x52d   : > { %v628_v23 = vadd.f32 %v1159_v42, %v626_v22   ;;  %v684_v36 = vpop.permute.xlu0 (%p430_p1), %683 }
 0x52e   : > { %v624_v24 = vpop.permute.xlu1 %623 }
 0x52f   : > { %v627_v16 = vmul.f32 %v800_v15, %v624_v24  ;;  %v1524_v42 = vmov %v628_v23 }
 0x531   : > { %v629_v25 = vadd.f32 %v1155_v41, %v627_v16  }
 0x533   : > { %v632_v26 = vpop.permute.xlu1 %631  ;;  %v1523_v41 = vmov %v629_v25 }
 0x534   : > { %v638_v27 = vmul.f32 %v800_v15, %v632_v26 }
 0x536   : > { %v640_v28 = vadd.f32 %v1151_v40, %v638_v27   ;;  %432 = sbr.rel (!%p430_p1) target bundleno = 687 (0x2af), region = 59 }
 0x537   : > { %v636_v29 = vpop.permute.xlu1 %635 }
 0x538   : > { %v639_v30 = vmul.f32 %v800_v15, %v636_v29  ;;  %v1522_v40 = vmov %v640_v28  ;;  %v692_v12 = vsub.f32 (%p430_p1), %v640_v28, %v684_v36 }
 0x53a   : > { %v641_v31 = vadd.f32 %v1147_v39, %v639_v30   ;;  %701 = vst.msk [vmem:[#allocation2 + $0x10] sm:$0xff] (%p430_p1), %vm694_vm15, %v692_v12 }
 0x53b   :  { %v668_v3 = vpop.permute.xlu1 (%p430_p1), %667 }
 0x53c   : > { %v1521_v39 = vmov %v641_v31  ;;  %v676_v38 = vsub.f32 (%p430_p1), %v628_v23, %v668_v3 }
 0x53e   :  { %698 = vst.msk [vmem:[#allocation2 + $0x8] sm:$0xff] %vm694_vm15, %v676_v38 }
 0x53f   :  { %v675_v51 = vpop.permute.xlu1 %674 }
 0x540   :  { %v677_v35 = vsub.f32 %v629_v25, %v675_v51 }
 0x542   :  { %699 = vst.msk [vmem:[#allocation2 + $0x20] sm:$0xff] %vm694_vm15, %v677_v35 }
 0x543   :  { %v691_v17 = vpop.permute.xlu1 %690 }
 0x544   :  { %v693_v63 = vsub.f32 %v641_v31, %v691_v17 }
 0x546   :  { %702 = vst.msk [vmem:[#allocation2 + $0x28] sm:$0xff] %vm694_vm15, %v693_v63 }
 0x547   :  { %1016 = shalt.err (!%p1013_p6)
}
 0x548   :  { %s1017_s30 = scalar_lea.hbm %s1507_s1, 768 }
 0x549   :  { %p1018_p7 = scmp.ne.s32.totalorder %s1507_s1, %s1017_s30  ;;  %p1021_p8 = scmp.lt.u32.totalorder %s1017_s30, %s1507_s1 }
 0x54b   :  { %p1023_p9 = pnand %p1021_p8, %p1018_p7 }
 0x54d   :  { %1026 = shalt.err (!%p1023_p9)
}
 0x54e   :  { %s1194_s7 = smov 128   ;;  %s1195_s8 = smov 8  }
 0x54f   :  { %721 = dma.vmem_to_hbm [thread:$0]  %s716_s26, 768, %s1507_s1, [#allocation3], %s1194_s7, %s1194_s7, %s1195_s8  }
 0x550   :  { %1103 = dma.done.wait [#allocation3], 768  }
 0x551   :  { %1104 = vsyncadd [#allocation3], 4294966528 }
 0x552   :  { %729 = vsyncpa [#allocation3], 1 }

</bundles_post_ra>
